<compile_context>
chip_gen: v6e
topology: v6e:2x2x1
jax: 0.10.0
libtpu: 0.0.40
codegen_flags: <defaults>
</compile_context>

<pallas_src>
import functools
import math

import jax
import jax.numpy as jnp
from jax.experimental import pallas as pl
from jax.experimental.pallas import tpu as pltpu


def _round_up(n, m):
    return ((n + m - 1) // m) * m


def mlp_kernel(x_ref, w1_ref, w2_ref, c_ref, o_ref, *, hidden, seg):
    """One batch tile, transposed formulation.

    x_ref : (TB, D)   bf16/f32  batch tile (batch on sublanes as loaded)
    w1_ref: (H, D)    bf16      layer1 weight, PyTorch [out, in] layout
    w2_ref: (H, H)    bf16      layer2 weight, PyTorch [out, in] layout
    c_ref : (4*seg,1) f32       packed [b1; b2; w3; b3] column vector
    o_ref : (1, TB)   f32       lane-dense output row for this tile
    """
    x = x_ref[...].astype(jnp.bfloat16)              # no-op when x is already bf16

    b1 = c_ref[0 * seg:0 * seg + hidden, :]          # (H, 1) f32
    b2 = c_ref[1 * seg:1 * seg + hidden, :]          # (H, 1) f32
    w3 = c_ref[2 * seg:2 * seg + hidden, :]          # (H, 1) f32
    b3 = c_ref[3 * seg:3 * seg + 1, :]               # (1, 1) f32

    # layer1: (H, TB) = W1 (H,D) . x^T (D,TB); NT dot_general (contract D on both),
    # bf16 operands, f32 accumulation on the MXU.
    h1 = jax.lax.dot_general(
        w1_ref[...], x,
        dimension_numbers=(((1,), (1,)), ((), ())),
        preferred_element_type=jnp.float32)
    h1 = jnp.maximum(h1 + b1, 0.0)                   # VPU, fully lane-dense

    # layer2: (H, TB) = W2 (H,H) . h1 (H,TB); standard MXU matmul.
    h2 = jnp.dot(w2_ref[...], h1.astype(jnp.bfloat16),
                 preferred_element_type=jnp.float32)
    h2 = jnp.maximum(h2 + b2, 0.0)                   # VPU, fully lane-dense

    # layer3 (H -> 1): per-lane multiply + cross-sublane reduce -> (1, TB) row.
    out = jnp.sum(h2 * w3, axis=0, keepdims=True) + b3
    o_ref[...] = out.astype(o_ref.dtype)             # unmasked lane-dense store


def regression_model_forward(x, params, *, block_batch=2048):
    """Batch-tiled forward pass.  Returns (B, 1) f32, matching nn.Module.forward."""
    w1, w2, cvec = params
    B, D = x.shape
    H = w1.shape[0]
    seg = cvec.shape[0] // 4

    # Tile size: multiple of 128 (lane-dense output), >= 2 grid steps whenever
    # B > 128 (v7x core split / pipeline overlap), big default for large B.
    half = max(128, _round_up(pl.cdiv(B, 2), 128))
    tb = max(128, min(_round_up(block_batch, 128), half))
    nb = pl.cdiv(B, tb)                              # ragged last block handled by Pallas

    kernel = functools.partial(mlp_kernel, hidden=H, seg=seg)

    flops = 2 * B * (D * H + H * H + H)
    bytes_accessed = (x.size * x.dtype.itemsize + w1.size * 2 + w2.size * 2
                      + cvec.size * 4 + B * 4)

    out = pl.pallas_call(
        kernel,
        out_shape=jax.ShapeDtypeStruct((1, nb * tb), jnp.float32),
        grid=(nb,),
        in_specs=[
            pl.BlockSpec((tb, D), lambda i: (i, 0)),         # x: streamed per batch tile
            pl.BlockSpec((H, D), lambda i: (0, 0)),          # w1: VMEM-resident
            pl.BlockSpec((H, H), lambda i: (0, 0)),          # w2: VMEM-resident
            pl.BlockSpec((4 * seg, 1), lambda i: (0, 0)),    # packed b1/b2/w3/b3
        ],
        out_specs=pl.BlockSpec((1, tb), lambda i: (0, i)),   # lane-dense output row
        compiler_params=pltpu.CompilerParams(
            dimension_semantics=("parallel",)),
        cost_estimate=pl.CostEstimate(
            flops=flops, transcendentals=0, bytes_accessed=bytes_accessed),
    )(x, w1, w2, cvec)

    return out[0, :B].reshape(B, 1)


def init_params(key, input_size):
    """Deterministic PyTorch-style init: U(-1/sqrt(fan_in), 1/sqrt(fan_in)).

    w1/w2 (MXU operands) are bf16 in PyTorch [out, in] layout; b1, b2, the final
    w3 row and b3 are f32, packed into a single (4*seg, 1) column vector so they
    ride in one resident DMA (sublane-aligned segments of length seg).
    """
    hidden = 2 * input_size
    seg = _round_up(hidden, 8)
    k1, k2, k3, k4, k5, k6 = jax.random.split(key, 6)

    def uniform(k, shape, fan_in):
        bound = 1.0 / math.sqrt(fan_in)
        return jax.random.uniform(k, shape, jnp.float32, -bound, bound)

    w1 = uniform(k1, (hidden, input_size), input_size).astype(jnp.bfloat16)
    b1 = uniform(k2, (hidden,), input_size)
    w2 = uniform(k3, (hidden, hidden), hidden).astype(jnp.bfloat16)
    b2 = uniform(k4, (hidden,), hidden)
    w3 = uniform(k5, (hidden,), hidden)
    b3 = uniform(k6, (), hidden)

    def seg_pad(v):
        return jnp.pad(v, (0, seg - v.shape[0]))

    cvec = jnp.concatenate(
        [seg_pad(b1), seg_pad(b2), seg_pad(w3), jnp.full((seg,), b3, jnp.float32)],
        axis=0)[:, None]                                   # (4*seg, 1) f32
    return w1, w2, cvec


if __name__ == "__main__":
    key = jax.random.PRNGKey(0)
    batch = 200            # not a multiple of the tile: exercises the ragged last block
    input_size = 32        # hidden = 64

    kx, kp = jax.random.split(key)
    # Producer emits bf16 directly (halves the dominant HBM stream; no wrapper cast).
    x = jax.random.normal(kx, (batch, input_size), jnp.bfloat16)
    params = init_params(kp, input_size)

    out = jax.block_until_ready(regression_model_forward(x, params))

    # Pure-JAX reference with the same bf16-operand / f32-accumulate math.
    w1, w2, cvec = params
    H = w1.shape[0]
    seg = cvec.shape[0] // 4
    b1 = cvec[0 * seg:0 * seg + H, 0]
    b2 = cvec[1 * seg:1 * seg + H, 0]
    w3 = cvec[2 * seg:2 * seg + H, 0]
    b3 = cvec[3 * seg, 0]
    h1 = jnp.maximum(
        jnp.dot(x, w1.T, preferred_element_type=jnp.float32) + b1[None, :], 0.0)
    h2 = jnp.maximum(
        jnp.dot(h1.astype(jnp.bfloat16), w2.T,
                preferred_element_type=jnp.float32) + b2[None, :], 0.0)
    ref = jnp.sum(h2 * w3[None, :], axis=-1, keepdims=True) + b3

    assert out.shape == (batch, 1), out.shape
    assert jnp.allclose(out, ref, atol=2e-3, rtol=2e-3), \
        float(jnp.max(jnp.abs(out - ref)))

    print("KERNEL_OK")
</pallas_src>

<mosaic_0001>
module attributes {stable_mosaic.version = 11 : i64} {
  func.func @mlp_kernel(%arg0: i32, %arg1: memref<128x32xbf16, #tpu.memory_space<vmem>>, %arg2: memref<64x32xbf16, #tpu.memory_space<vmem>>, %arg3: memref<64x64xbf16, #tpu.memory_space<vmem>>, %arg4: memref<256x1xf32, #tpu.memory_space<vmem>>, %arg5: memref<1x128xf32, #tpu.memory_space<vmem>>) attributes {dimension_semantics = [#tpu.dimension_semantics<parallel>], iteration_bounds = array<i64: 2>, scalar_prefetch = 0 : i64, scratch_operands = 0 : i64, tpu.core_type = #tpu.core_type<tc>, window_params = [{transform_indices = @transform_0, window_bounds = array<i64: 128, 32>}, {pipeline_mode = #tpu.pipeline_mode<synchronous>, transform_indices = @transform_1, window_bounds = array<i64: 64, 32>}, {pipeline_mode = #tpu.pipeline_mode<synchronous>, transform_indices = @transform_2, window_bounds = array<i64: 64, 64>}, {pipeline_mode = #tpu.pipeline_mode<synchronous>, transform_indices = @transform_3, window_bounds = array<i64: 256, 1>}, {transform_indices = @transform_4, window_bounds = array<i64: 1, 128>}]} {
    %c0 = arith.constant 0 : index
    %c0_0 = arith.constant 0 : index
    %0 = vector.load %arg1[%c0, %c0_0] : memref<128x32xbf16, #tpu.memory_space<vmem>>, vector<128x32xbf16>
    %c0_1 = arith.constant 0 : index
    %c0_2 = arith.constant 0 : index
    %1 = vector.load %arg4[%c0_1, %c0_2] : memref<256x1xf32, #tpu.memory_space<vmem>>, vector<64x1xf32>
    %c64 = arith.constant 64 : index
    %c0_3 = arith.constant 0 : index
    %2 = vector.load %arg4[%c64, %c0_3] : memref<256x1xf32, #tpu.memory_space<vmem>>, vector<64x1xf32>
    %c128 = arith.constant 128 : index
    %c0_4 = arith.constant 0 : index
    %3 = vector.load %arg4[%c128, %c0_4] : memref<256x1xf32, #tpu.memory_space<vmem>>, vector<64x1xf32>
    %c192 = arith.constant 192 : index
    %c0_5 = arith.constant 0 : index
    %4 = vector.load %arg4[%c192, %c0_5] : memref<256x1xf32, #tpu.memory_space<vmem>>, vector<1x1xf32>
    %c0_6 = arith.constant 0 : index
    %c0_7 = arith.constant 0 : index
    %5 = vector.load %arg2[%c0_6, %c0_7] : memref<64x32xbf16, #tpu.memory_space<vmem>>, vector<64x32xbf16>
    %cst = arith.constant dense<0.000000e+00> : vector<64x128xf32>
    %6 = tpu.matmul %5, %0, %cst {dimension_numbers = #tpu.dot_dimension_numbers<[1], [1], [0], [0], [0, 0, 1, 0], [], []>} : vector<64x32xbf16>, vector<128x32xbf16>, vector<64x128xf32> -> vector<64x128xf32>
    %7 = vector.broadcast %1 : vector<64x1xf32> to vector<64x128xf32>
    %8 = arith.addf %6, %7 : vector<64x128xf32>
    %cst_8 = arith.constant 0.000000e+00 : f32
    %9 = vector.broadcast %cst_8 : f32 to vector<64x128xf32>
    %10 = arith.maximumf %8, %9 : vector<64x128xf32>
    %c0_9 = arith.constant 0 : index
    %c0_10 = arith.constant 0 : index
    %11 = vector.load %arg3[%c0_9, %c0_10] : memref<64x64xbf16, #tpu.memory_space<vmem>>, vector<64x64xbf16>
    %12 = arith.truncf %10 : vector<64x128xf32> to vector<64x128xbf16>
    %cst_11 = arith.constant dense<0.000000e+00> : vector<64x128xf32>
    %13 = tpu.matmul %11, %12, %cst_11 {dimension_numbers = #tpu.dot_dimension_numbers<[1], [0], [0], [1], [0, 0, 1, 1], [], []>} : vector<64x64xbf16>, vector<64x128xbf16>, vector<64x128xf32> -> vector<64x128xf32>
    %14 = vector.broadcast %2 : vector<64x1xf32> to vector<64x128xf32>
    %15 = arith.addf %13, %14 : vector<64x128xf32>
    %cst_12 = arith.constant 0.000000e+00 : f32
    %16 = vector.broadcast %cst_12 : f32 to vector<64x128xf32>
    %17 = arith.maximumf %15, %16 : vector<64x128xf32>
    %18 = vector.broadcast %3 : vector<64x1xf32> to vector<64x128xf32>
    %19 = arith.mulf %17, %18 : vector<64x128xf32>
    %cst_13 = arith.constant dense<0.000000e+00> : vector<128xf32>
    %20 = vector.multi_reduction <add>, %19, %cst_13 [0] : vector<64x128xf32> to vector<128xf32>
    %21 = vector.shape_cast %20 : vector<128xf32> to vector<1x128xf32>
    %22 = vector.broadcast %4 : vector<1x1xf32> to vector<1x128xf32>
    %23 = arith.addf %21, %22 : vector<1x128xf32>
    %c0_14 = arith.constant 0 : index
    %c0_15 = arith.constant 0 : index
    %24 = vector.load %arg5[%c0_14, %c0_15] : memref<1x128xf32, #tpu.memory_space<vmem>>, vector<1x128xf32>
    tpu.vector_store %arg5[%c0_14, %c0_15], %23 {strides = array<i32>} : memref<1x128xf32, #tpu.memory_space<vmem>>, vector<1x128xf32>,
    return
  }
  func.func @transform_0(%arg0: i32) -> (i32, i32) {
    %c0_i32 = arith.constant 0 : i32
    %c0_i32_0 = arith.constant 0 : i32
    return %arg0, %c0_i32 : i32, i32
  }
  func.func @transform_1(%arg0: i32) -> (i32, i32) {
    %c0_i32 = arith.constant 0 : i32
    %c0_i32_0 = arith.constant 0 : i32
    %c0_i32_1 = arith.constant 0 : i32
    return %c0_i32, %c0_i32_0 : i32, i32
  }
  func.func @transform_2(%arg0: i32) -> (i32, i32) {
    %c0_i32 = arith.constant 0 : i32
    %c0_i32_0 = arith.constant 0 : i32
    %c0_i32_1 = arith.constant 0 : i32
    return %c0_i32, %c0_i32_0 : i32, i32
  }
  func.func @transform_3(%arg0: i32) -> (i32, i32) {
    %c0_i32 = arith.constant 0 : i32
    %c0_i32_0 = arith.constant 0 : i32
    %c0_i32_1 = arith.constant 0 : i32
    return %c0_i32, %c0_i32_0 : i32, i32
  }
  func.func @transform_4(%arg0: i32) -> (i32, i32) {
    %c0_i32 = arith.constant 0 : i32
    %c0_i32_0 = arith.constant 0 : i32
    return %c0_i32, %arg0 : i32, i32
  }
}

</mosaic_0001>

<bundles_post_ra>
// kernel: tpu_custom_call.1
= control target key start
LH: loop header
LB: loop body
LE: loop exit
PB: predicated region body
PF: predicated region fallthrough
CT: control target
= control target key end

     0   :  { %9 = vsyncpa [#allocation3], 0  ;;  %s1238_s0 = inlined_call_operand.vmem [shape: bf16[200,32], index: 0, kind: input, shape index: {}]   ;;  %s1239_s1 = inlined_call_operand.vmem [shape: bf16[64,32], index: 1, kind: input, shape index: {}]   ;;  %s1240_s2 = inlined_call_operand.vmem [shape: bf16[64,64], index: 2, kind: input, shape index: {}]   ;;  %s1241_s3 = inlined_call_operand.vmem [shape: f32[256,1], index: 3, kind: input, shape index: {}]   ;;  %s1242_s4 = inlined_call_operand.hbm [shape: f32[1,256], index: 4, kind: output, shape index: {}]  }
   0x1   :  { %11 = vsyncpa [#allocation3 + $0x1], 0  ;;  %s1019_s15 = smov 0   ;;  %s1021_s16 = smov 0  }
   0x2   :  { %s1023_s17 = smov 0   ;;  %s1025_s18 = smov 0  }
   0x3 LB: > { %s770_s19 = sadd.s32 4294967295, %s990_s18   ;;  %s771_s20 = sadd.s32 4294967294, %s990_s18   ;;  %s990_s18 = sphi %s1025_s18, %s1248_s18   ;;  %s986_s17 = sphi %s1023_s17, %s1247_s17   ;;  %s982_s16 = sphi %s1021_s16, %s1246_s16   ;;  %s978_s15 = sphi %s1019_s15, %s1245_s15  }
   0x4   : > { %s1042_s21 = sadd.s32 1, %s990_s18   ;;  %s113_s22 = sadd.s32 1, %s986_s17 }
   0x5   : > { %s110_s23 = ssub.s32 %s990_s18, %s1042_s21  ;;  %p123_p0 = scmp.ne.s32.totalorder %s986_s17, %s982_s16 }
   0x6   : > { %p111_p1 = scmp.eq.s32.totalorder %s110_s23, 0  ;;  %p124_p2 = scmp.eq.s32.totalorder %s770_s19, 1 }
   0x7   : > { %p129_p3 = scmp.ne.s32.totalorder %s982_s16, %s978_s15  ;;  %p130_p4 = scmp.eq.s32.totalorder %s771_s20, 1 }
   0x8   : > { %s1052_s24 = scalar_select %p111_p1, %s986_s17, %s113_s22  }
   0x9   : > { %p1054_p5 = por %p124_p2, %p123_p0  ;;  %p1058_p6 = por %p130_p4, %p129_p3 }
   0xa   : > { %p774_p7 = scmp.ge.s32.totalorder %s990_s18, 1  ;;  %p174_p8 = scmp.lt.s32.totalorder %s990_s18, 3 }
   0xc   : > { %p175_p9 = pnand %p774_p7, %p174_p8 }
   0xd   : > { %s1064_s27 = sshll.u32 (!%p175_p9), %s770_s19, 4 }
   0xe   : > { %178 = sbr.rel (%p175_p9) target bundleno = 561 (0x231), region = 36  ;;  %p208_p10 = scmp.lt.s32.totalorder (!%p175_p9), %s1064_s27, 24 }
   0xf   : > { %s714_s13 = scalar_lea.hbm (!%p175_p9), %s1242_s4, %s1064_s27 }
  0x13   : > { %v922_v0 = vld [vmem:[%s1239_s1] sm:$0xff]   ;;  %vm367_vm0 = vcmask 261120   ;;  %s209_s30 = scalar_select %p208_p10, %s1064_s27, 24  ;;  %v992_v1 = vmov 0   ;;  %v240_v2 = vld [vmem:[%s1241_s3 + $0x30] sm:$0xff]  ;;  %v241_v4 = vld [vmem:[%s1241_s3 + $0x38] sm:$0xff] }
  0x14   : > { %840 = vmatprep.mubr.msk.bf16.mxu0 %vm367_vm0, %v922_v0  ;;  %912 = vset.pattern.permute.xlu0 %v992_v1  ;;  %v238_v3 = vld [vmem:[%s1241_s3 + $0x20] sm:$0xff]  ;;  %v239_v5 = vld [vmem:[%s1241_s3 + $0x28] sm:$0xff]  ;;  %v236_v9 = vld [vmem:[%s1241_s3 + $0x10] sm:$0xff]  ;;  %vm549_vm1 = vcmask 523264  }
  0x15   : > { %913 = vset.pattern.permute.xlu1 %v992_v1  ;;  %s776_s7 = sshll.u32 %s209_s30, 2  ;;  %299 = vperm.xlu0 %912, %v240_v2   ;;  %v237_v10 = vld [vmem:[%s1241_s3 + $0x18] sm:$0xff]  ;;  %v234_v11 = vld [vmem:[%s1241_s3] sm:$0xff]  ;;  %v235_v14 = vld [vmem:[%s1241_s3 + $0x8] sm:$0xff] }
  0x16   : > { %s1081_s12 = scalar_lea.vmem %s1238_s0, %s776_s7  ;;  %289 = vperm.xlu1 %913, %v238_v3   ;;  %v242_v15 = vld [vmem:[%s1241_s3 + $0x40] sm:$0xff]  ;;  %v243_v16 = vld [vmem:[%s1241_s3 + $0x48] sm:$0xff]  ;;  %v244_v17 = vld [vmem:[%s1241_s3 + $0x50] sm:$0xff]  ;;  %s201_s7 = sand.u32 1, %s982_s16  }
  0x17   : > { %v914_v6 = vld [vmem:[%s1081_s12 + $0x38] sm:$0xff]   ;;  %v915_v7 = vld [vmem:[%s1081_s12 + $0x30] sm:$0xff]   ;;  %v916_v13 = vld [vmem:[%s1081_s12 + $0x28] sm:$0xff]   ;;  %s202_s8 = scalar_lea.vmem [#allocation2], %s201_s7  ;;  %s704_s14 = scalar_lea.sflag [#allocation3], %s201_s7 }
  0x18   : > { %864 = vmatprep.subr.msk.bf16.mxu0 %vm367_vm0, %v914_v6  ;;  %v402_v8 = vsel %vm367_vm0, %v914_v6, 0  ;;  %v399_v12 = vsel %vm367_vm0, %v915_v7, 0  ;;  %v396_v18 = vsel %vm367_vm0, %v916_v13, 0  ;;  %v917_v19 = vld [vmem:[%s1081_s12 + $0x20] sm:$0xff]   ;;  %v245_v20 = vld [vmem:[%s1241_s3 + $0x58] sm:$0xff]  ;;  %v251_v22 = vld [vmem:[%s1241_s3 + $0x88] sm:$0xff] }
  0x19   : > { %304 = vperm.xlu0 %912, %v241_v4   ;;  %825 = vmatpush3.bf16.xpose.msra.mxu0 %v402_v8  ;;  %v250_v21 = vld [vmem:[%s1241_s3 + $0x80] sm:$0xff]  ;;  %v393_v24 = vsel %vm367_vm0, %v917_v19, 0  ;;  %v918_v25 = vld [vmem:[%s1081_s12 + $0x18] sm:$0xff]   ;;  %v252_v26 = vld [vmem:[%s1241_s3 + $0x90] sm:$0xff]  ;;  %s716_s9 = sshll.u32 %s202_s8, 4  ;;  %s717_s9 = int_to_ptr.vmem [resolvable:$true] %s716_s9 }
  0x1a   : > { %294 = vperm.xlu1 %913, %v239_v5   ;;  %865 = vmatprep.subr.msk.bf16.mxu0 %vm367_vm0, %v915_v7  ;;  %v246_v23 = vld [vmem:[%s1241_s3 + $0x60] sm:$0xff]  ;;  %v247_v27 = vld [vmem:[%s1241_s3 + $0x68] sm:$0xff]  ;;  %v253_v28 = vld [vmem:[%s1241_s3 + $0x98] sm:$0xff]  ;;  %v390_v30 = vsel %vm367_vm0, %v918_v25, 0  ;;  %s930_s19 = scalar_lea.vmem %s717_s9, 16 }
  0x1b   : > { %v248_v29 = vld [vmem:[%s1241_s3 + $0x70] sm:$0xff]  ;;  %v254_v32 = vld [vmem:[%s1241_s3 + $0xa0] sm:$0xff]  ;;  %v249_v33 = vld [vmem:[%s1241_s3 + $0x78] sm:$0xff]  ;;  %p931_p11 = scmp.ne.s32.totalorder %s717_s9, %s930_s19 }
  0x1c   : > { %v919_v31 = vld [vmem:[%s1081_s12 + $0x10] sm:$0xff]   ;;  %v255_v34 = vld [vmem:[%s1241_s3 + $0xa8] sm:$0xff]  ;;  %v257_v38 = vld [vmem:[%s1241_s3 + $0xb8] sm:$0xff] }
  0x1d   : > { %279 = vperm.xlu0 %912, %v236_v9   ;;  %v256_v35 = vld [vmem:[%s1241_s3 + $0xb0] sm:$0xff]  ;;  %v387_v36 = vsel %vm367_vm0, %v919_v31, 0  ;;  %v920_v37 = vld [vmem:[%s1081_s12 + $0x8] sm:$0xff]   ;;  %v258_v39 = vld [vmem:[%s1241_s3 + $0xc0] sm:$0x1]  ;;  %p932_p12 = pnand %p931_p11, %p1054_p5 }
  0x1e   : > { %284 = vperm.xlu1 %913, %v237_v10   ;;  %v384_v40 = vsel %vm367_vm0, %v920_v37, 0  ;;  %v921_v41 = vld [vmem:[%s1081_s12] sm:$0xff]   ;;  %v923_v43 = vld [vmem:[%s1239_s1 + $0x8] sm:$0xff]   ;;  %v924_v44 = vld [vmem:[%s1239_s1 + $0x10] sm:$0xff]   ;;  %s993_s12 = smov [#allocation2]  }
  0x1f   : > { %v381_v42 = vsel %vm367_vm0, %v921_v41, 0  ;;  %v925_v45 = vld [vmem:[%s1239_s1 + $0x18] sm:$0xff]   ;;  %v926_v46 = vld [vmem:[%s1240_s2] sm:$0xff]   ;;  %p933_p13 = pneg %p932_p12  ;;  %s934_s20 = sshll.u32 %s993_s12, 4  ;;  %s935_s20 = int_to_ptr.vmem [resolvable:$false] %s934_s20 }
  0x20   : > { %856 = vmatprep.mubr.msk.bf16.mxu1 %vm549_vm1, %v926_v46  ;;  %s936_s22 = scalar_lea.vmem %s935_s20, 32  ;;  %p937_p0 = scmp.lt.s32.totalorder %s717_s9, %s935_s20 }
  0x21   : > { %269 = vperm.xlu0 %912, %v234_v11   ;;  %827 = vmatpush3.bf16.xpose.msra.mxu0 %v399_v12  ;;  %p938_p1 = scmp.lt.s32.totalorder %s936_s22, %s930_s19 }
  0x22   : > { %274 = vperm.xlu1 %913, %v235_v14   ;;  %866 = vmatprep.subr.msk.bf16.mxu0 %vm367_vm0, %v916_v13 }
  0x23   : > { %p939_p2 = por %p938_p1, %p937_p0 }
  0x25   : > { %491 = vperm.xlu0 %912, %v242_v15   ;;  %p940_p3 = pnand %p939_p2, %p933_p13 }
  0x26   : > { %496 = vperm.xlu1 %913, %v243_v16  }
  0x29   : > { %501 = vperm.xlu0 %912, %v244_v17   ;;  %829 = vmatpush3.bf16.xpose.msra.mxu0 %v396_v18 }
  0x2a   : > { %506 = vperm.xlu1 %913, %v245_v20   ;;  %867 = vmatprep.subr.msk.bf16.mxu0 %vm367_vm0, %v917_v19  ;;  %v927_v19 = vld [vmem:[%s1240_s2 + $0x8] sm:$0xff]   ;;  %v928_v20 = vld [vmem:[%s1240_s2 + $0x10] sm:$0xff]  }
  0x2d   : > { %637 = vperm.xlu0 %912, %v250_v21   ;;  %v929_v21 = vld [vmem:[%s1240_s2 + $0x18] sm:$0xff]  }
  0x2e   : > { %642 = vperm.xlu1 %913, %v251_v22  }
  0x31   : > { %511 = vperm.xlu0 %912, %v246_v23   ;;  %831 = vmatpush3.bf16.xpose.msra.mxu0 %v393_v24 }
  0x32   : > { %647 = vperm.xlu1 %913, %v252_v26   ;;  %868 = vmatprep.subr.msk.bf16.mxu0 %vm367_vm0, %v918_v25 }
  0x35   : > { %516 = vperm.xlu0 %912, %v247_v27  }
  0x36   : > { %652 = vperm.xlu1 %913, %v253_v28  }
  0x39   : > { %521 = vperm.xlu0 %912, %v248_v29   ;;  %833 = vmatpush3.bf16.xpose.msra.mxu0 %v390_v30 }
  0x3a   : > { %657 = vperm.xlu1 %913, %v254_v32   ;;  %869 = vmatprep.subr.msk.bf16.mxu0 %vm367_vm0, %v919_v31 }
  0x3d   : > { %526 = vperm.xlu0 %912, %v249_v33  }
  0x3e   : > { %662 = vperm.xlu1 %913, %v255_v34  }
  0x41   : > { %667 = vperm.xlu0 %912, %v256_v35   ;;  %835 = vmatpush3.bf16.xpose.msra.mxu0 %v387_v36 }
  0x42   : > { %672 = vperm.xlu1 %913, %v257_v38   ;;  %870 = vmatprep.subr.msk.bf16.mxu0 %vm367_vm0, %v920_v37 }
  0x45   : > { %698 = vperm.xlu0 %912, %v258_v39  }
  0x49   : > { %837 = vmatpush3.bf16.xpose.msra.mxu0 %v384_v40 }
  0x4a   : > { %871 = vmatprep.subr.msk.bf16.mxu0 %vm367_vm0, %v921_v41 }
  0x51   : > { %839 = vmatpush3.bf16.xpose.msra.mxu0 %v381_v42 }
  0x58   : > { %841 = vmatmul.mubr.msk.bf16.vlgmr.msra.gmra.mxu0 %vm367_vm0, %v923_v43 }
  0x59   : > { %844 = vmatprep.mubr.msk.bf16.mxu0 %vm367_vm0, %v924_v44 }
  0x60   : > { %845 = vmatmul.mubr.msk.bf16.gmra.mxu0 %vm367_vm0, %v925_v45 }
  0x90   : > { %v300_v49 = vpop.permute.xlu0 %299 }
  0x91   : > { %v290_v47 = vpop.permute.xlu1 %289 }
  0x94   : > { %v305_v54 = vpop.permute.xlu0 %304 }
  0x95   : > { %v295_v52 = vpop.permute.xlu1 %294 }
  0x98   : > { %v280_v62 = vpop.permute.xlu0 %279 }
  0x99   : > { %v285_v58 = vpop.permute.xlu1 %284 }
  0x9c   : > { %v270_v12 = vpop.permute.xlu0 %269 }
  0x9d   : > { %v275_v8 = vpop.permute.xlu1 %274 }
  0xa0   : > { %v492_v22 = vpop.permute.xlu0 %491 }
  0xa1   : > { %v497_v23 = vpop.permute.xlu1 %496 }
  0xa4   : > { %v502_v24 = vpop.permute.xlu0 %501 }
  0xa5   : > { %v507_v25 = vpop.permute.xlu1 %506 }
  0xa8   : > { %v638_v26 = vpop.permute.xlu0 %637 }
  0xa9   : > { %v643_v27 = vpop.permute.xlu1 %642 }
  0xac   : > { %v512_v28 = vpop.permute.xlu0 %511 }
  0xad   : > { %v648_v29 = vpop.permute.xlu1 %647 }
  0xb0   : > { %v517_v31 = vpop.permute.xlu0 %516 }
  0xb1   : > { %v653_v34 = vpop.permute.xlu1 %652 }
  0xb4   : > { %v522_v41 = vpop.permute.xlu0 %521 }
  0xb5   : > { %v658_v45 = vpop.permute.xlu1 %657 }
 0x118   : > { %v842_v48 = vpop.f32.mrf.mxu0 }
 0x119   : > { %v447_v4 = vadd.f32 %v842_v48, %v280_v62  ;;  %v663_v62 = vpop.permute.xlu1 %662 }
 0x11a   : > { %v438_v50 = vpop.f32.mrf.mxu0 }
 0x11b   : > { %v471_v13 = vmax.f32 %v447_v4, 0.0  ;;  %v439_v14 = vadd.f32 %v438_v50, %v270_v12 }
 0x11c   : > { %v843_v51 = vpop.f32.mrf.mxu0 }
 0x11d   : > { %v450_v0 = vadd.f32 %v843_v51, %v285_v58  ;;  %v469_v17 = vmax.f32 %v439_v14, 0.0 }
 0x11e   : > { %v441_v53 = vpop.f32.mrf.mxu0 }
 0x11f   : > { %v472_v9 = vmax.f32 %v450_v0, 0.0  ;;  %v442_v10 = vadd.f32 %v441_v53, %v275_v8 }
 0x120   : > { %v846_v55 = vpop.f32.mrf.mxu0 }
 0x121   : > { %v463_v57 = vadd.f32 %v846_v55, %v300_v49  ;;  %v486_v15 = vpack.c.bf16 %v472_v9, %v471_v13  ;;  %v470_v16 = vmax.f32 %v442_v10, 0.0  ;;  %v673_v9 = vpop.permute.xlu1 %672 }
 0x122   : > { %v454_v56 = vpop.f32.mrf.mxu0 }
 0x123   : > { %v455_v60 = vadd.f32 %v454_v56, %v290_v47  ;;  %v475_v1 = vmax.f32 %v463_v57, 0.0  ;;  %v485_v18 = vpack.c.bf16 %v470_v16, %v469_v17  ;;  %v527_v56 = vpop.permute.xlu0 %526 }
 0x124   : > { %v847_v59 = vpop.f32.mrf.mxu0 }
 0x125   : > { %v466_v61 = vadd.f32 %v847_v59, %v305_v54  ;;  %v473_v5 = vmax.f32 %v455_v60, 0.0 }
 0x126   : > { %v457_v63 = vpop.f32.mrf.mxu0 }
 0x127   : > { %v476_v2 = vmax.f32 %v466_v61, 0.0  ;;  %v458_v3 = vadd.f32 %v457_v63, %v295_v52 }
 0x129   : > { %v474_v6 = vmax.f32 %v458_v3, 0.0  ;;  %v488_v7 = vpack.c.bf16 %v476_v2, %v475_v1 }
 0x12b   : > { %v487_v11 = vpack.c.bf16 %v474_v6, %v473_v5  ;;  %848 = vmatprep.subr.bf16.mxu1 %v488_v7  ;;  %v668_v6 = vpop.permute.xlu0 %667 }
 0x12c   : > { %849 = vmatpush3.bf16.msra.mxu1 %v488_v7 }
 0x12d   : > { %850 = vmatprep.subr.bf16.mxu1 %v487_v11 }
 0x130   : > { %851 = vmatpush3.bf16.msra.mxu1 %v487_v11 }
 0x131   : > { %852 = vmatprep.subr.bf16.mxu1 %v486_v15 }
 0x134   : > { %853 = vmatpush3.bf16.msra.mxu1 %v486_v15 }
 0x135   : > { %854 = vmatprep.subr.bf16.mxu1 %v485_v18 }
 0x138   : > { %855 = vmatpush3.bf16.msra.mxu1 %v485_v18 }
 0x13b   : > { %857 = vmatmul.mubr.msk.bf16.vlgmr.msra.gmra.mxu1 %vm549_vm1, %v927_v19  ;;  %v699_v19 = vpop.permute.xlu0 %698 }
 0x13c   : > { %860 = vmatprep.mubr.msk.bf16.mxu1 %vm549_vm1, %v928_v20 }
 0x143   : > { %861 = vmatmul.mubr.msk.bf16.gmra.mxu1 %vm549_vm1, %v929_v21 }
 0x1fb   : > { %v858_v30 = vpop.f32.mrf.mxu1 }
 0x1fc   : > { %v605_v36 = vadd.f32 %v858_v30, %v502_v24 }
 0x1fd   : > { %v596_v32 = vpop.f32.mrf.mxu1 }
 0x1fe   : > { %v597_v33 = vadd.f32 %v596_v32, %v492_v22  ;;  %v629_v43 = vmax.f32 %v605_v36, 0.0 }
 0x1ff   : > { %v859_v35 = vpop.f32.mrf.mxu1 }
 0x200   : > { %v627_v38 = vmax.f32 %v597_v33, 0.0  ;;  %v608_v39 = vadd.f32 %v859_v35, %v507_v25  ;;  %v677_v52 = vmul.f32 %v648_v29, %v629_v43 }
 0x201   : > { %v599_v37 = vpop.f32.mrf.mxu1 }
 0x202   : > { %v600_v40 = vadd.f32 %v599_v37, %v497_v23  ;;  %v675_v47 = vmul.f32 %v638_v26, %v627_v38  ;;  %v630_v48 = vmax.f32 %v608_v39, 0.0 }
 0x203   : > { %v862_v42 = vpop.f32.mrf.mxu1 }
 0x204   : > { %v628_v44 = vmax.f32 %v600_v40, 0.0  ;;  %v621_v54 = vadd.f32 %v862_v42, %v522_v41  ;;  %v678_v58 = vmul.f32 %v653_v34, %v630_v48 }
 0x205   : > { %v612_v46 = vpop.f32.mrf.mxu1 }
 0x206   : > { %v676_v49 = vmul.f32 %v643_v27, %v628_v44  ;;  %v613_v50 = vadd.f32 %v612_v46, %v512_v28  ;;  %v633_v63 = vmax.f32 %v621_v54, 0.0 }
 0x207   : > { %v863_v51 = vpop.f32.mrf.mxu1 }
 0x208   : > { %v683_v53 = vadd.f32 %v676_v49, %v675_v47  ;;  %v631_v55 = vmax.f32 %v613_v50, 0.0  ;;  %v624_v60 = vadd.f32 %v863_v51, %v527_v56  ;;  %v681_v7 = vmul.f32 %v668_v6, %v633_v63 }
 0x209   : > { %v615_v57 = vpop.f32.mrf.mxu1 }
 0x20a   : > { %v684_v59 = vadd.f32 %v683_v53, %v677_v52  ;;  %v616_v61 = vadd.f32 %v615_v57, %v517_v31  ;;  %v679_v0 = vmul.f32 %v658_v45, %v631_v55  ;;  %v634_v4 = vmax.f32 %v624_v60, 0.0 }
 0x20c   : > { %v685_v1 = vadd.f32 %v684_v59, %v678_v58  ;;  %v632_v2 = vmax.f32 %v616_v61, 0.0  ;;  %v682_v10 = vmul.f32 %v673_v9, %v634_v4 }
 0x20e   : > { %v686_v3 = vadd.f32 %v685_v1, %v679_v0  ;;  %v680_v5 = vmul.f32 %v663_v62, %v632_v2 }
 0x210   : > { %v687_v8 = vadd.f32 %v686_v3, %v680_v5 }
 0x212   : > { %v688_v11 = vadd.f32 %v687_v8, %v681_v7 }
 0x214   : > { %v689_v12 = vadd.f32 %v688_v11, %v682_v10 }
 0x216   : > { %v690_v13 = vrot.slane %v689_v12, 4 }
 0x218   : > { %v691_v14 = vadd.f32 %v690_v13, %v689_v12 }
 0x21a   : > { %v692_v15 = vrot.slane %v691_v14, 2 }
 0x21c   : > { %v693_v16 = vadd.f32 %v692_v15, %v691_v14 }
 0x21e   : > { %v694_v17 = vrot.slane %v693_v16, 1 }
 0x220   : > { %v695_v18 = vadd.f32 %v694_v17, %v693_v16 }
 0x222   : > { %v701_v20 = vadd.f32 %v699_v19, %v695_v18 }
 0x224   : > { %702 = vst [vmem:[%s202_s8] sm:$0x1] %v701_v20 }
 0x225   : > { %943 = shalt.err (!%p940_p3)
}
 0x226   : > { %s944_s23 = scalar_lea.hbm %s714_s13, 16  ;;  %s948_s29 = scalar_lea.hbm %s1242_s4, 32 }
 0x227   : > { %p945_p4 = scmp.ne.s32.totalorder %s714_s13, %s944_s23  ;;  %p949_p9 = scmp.lt.s32.totalorder %s714_s13, %s1242_s4 }
 0x228   : > { %p950_p10 = scmp.lt.s32.totalorder %s948_s29, %s944_s23 }
 0x229   : > { %p946_p7 = pnand %p945_p4, %p1054_p5 }
 0x22a   : > { %p951_p11 = por %p950_p10, %p949_p9 }
 0x22b   : > { %p947_p8 = pneg %p946_p7 }
 0x22d   : > { %p952_p12 = pnand %p951_p11, %p947_p8 }
 0x22f   : > { %955 = shalt.err (!%p952_p12)
}
 0x230   : > { %872 = dma.vmem_to_hbm [thread:$0]  (%p1054_p5), %s717_s9, 16, %s714_s13, %s704_s14  }
 0x231 PF: > { %p878_p13 = scmp.ge.s32.totalorder %s990_s18, 2  ;;  %s728_s6 = sand.u32 1, %s978_s15  }
 0x232   : > { %s729_s7 = scalar_lea.sflag [#allocation3], %s728_s6 }
 0x233   : > { %p875_p0 = pnand %p878_p13, %p1058_p6 }
 0x235   : > { %p876_p1 = pneg %p875_p0 }
 0x237   : > { %973 = dma.done.wait (%p876_p1), %s729_s7, 16  }
 0x238   : > { %975 = vsyncadd (%p876_p1), %s729_s7, 4294967280  ;;  %p14_p2 = scmp.ge.s32.totalorder %s1042_s21, 4   ;;  %s1245_s15 = smov %s982_s16 }
 0x239   : > { %s1246_s16 = smov %s986_s17  ;;  %s1247_s17 = smov %s1052_s24 }
 0x23a   : > { %s1248_s18 = smov %s1042_s21  ;;  %16 = sbr.rel (!%p14_p2) target bundleno = 3 (0x3), region = 71 }
 0x23f   :  { %733 = vsyncpa [#allocation3], 1 }
 0x240   :  { %735 = vsyncpa [#allocation3 + $0x1], 1 }

</bundles_post_ra>
